<compile_context>
chip_gen: v7x
topology: tpu7x:2x2x1
jax: 0.10.0
libtpu: 0.0.40
codegen_flags: <defaults>
</compile_context>

<pallas_src>
import jax
import jax.numpy as jnp
from jax.experimental import pallas as pl
from jax.experimental.pallas import tpu as pltpu


def _identity_kernel(x_ref, h_ref, w1aug_ref, wqt_ref, bq_ref, out_ref):
    # x_ref     : (1, TB, S, C)   input_vectors, channels-last (lanes = C)
    # h_ref     : (1, TB, C)      last hidden state
    # w1aug_ref : (C, C+1)        [W1 | b1]  (fc_1 weight with bias folded in)
    # wqt_ref   : (C, A)          q_net weight, pre-transposed to (in, out)
    # bq_ref    : (1, A)          q_net bias
    # out_ref   : (1, TB, A+S+C)  fused output slab [q | attention_w | context]
    x = x_ref[0]                                                     # (TB, S, C)
    h = h_ref[0]                                                     # (TB, C)
    C = x.shape[-1]

    # [v | hb] = h @ [W1 | b1]   (bias folded into a single MXU pass)
    #   v  = W1^T h   (per-batch projection vector)
    #   hb = b1 . h   (scalar bias term of the rewritten alignment score)
    vh = jnp.dot(h, w1aug_ref[...], preferred_element_type=jnp.float32)   # (TB, C+1)
    v = vh[:, :C]                                                    # (TB, C)
    hb = vh[:, C:]                                                   # (TB, 1)

    # score[b, s] = x[b, s, :] . v[b, :] + hb[b]
    # (rewrite of  h . (W1 x_s + b1) -- removes the (S,C)x(C,C) projection matmul)
    scores = jnp.einsum('bnc,bsc->bns', v[:, None, :], x,
                        preferred_element_type=jnp.float32)[:, 0, :] + hb  # (TB, S)

    # softmax over the sequence axis (lanes); exact normalization
    m = jnp.max(scores, axis=-1, keepdims=True)
    e = jnp.exp(scores - m)
    w = e / jnp.sum(e, axis=-1, keepdims=True)                       # (TB, S)

    # context[b, c] = sum_s w[b, s] * x[b, s, c]   (batched matvec on the MXU)
    ctx = jnp.einsum('bns,bsc->bnc', w[:, None, :], x,
                     preferred_element_type=jnp.float32)[:, 0, :]    # (TB, C)

    # q = context @ Wq^T + bq
    q = jnp.dot(ctx, wqt_ref[...],
                preferred_element_type=jnp.float32) + bq_ref[...]    # (TB, A)

    # single VMEM output block -> one writeback DMA per grid step
    A = q.shape[-1]
    S = w.shape[-1]
    out_ref[0, :, :A] = q
    out_ref[0, :, A:A + S] = w
    out_ref[0, :, A + S:] = ctx


def _pick_batch_block(B, S, C, A, vmem_budget_bytes=24 << 20, max_tb=512,
                      megacore_split_bytes=4 << 20):
    """Largest divisor of B (<= max_tb) whose double-buffered working set fits
    the VMEM budget.  Bigger blocks => fewer ~0.35us grid steps.  We no longer
    force >= 2 grid blocks at tiny batch sizes; a v7x megacore split is only
    re-introduced when per-block work is large enough to amortize the step."""
    def x_bytes(tb):
        return tb * S * C * 4

    def block_bytes(tb):
        # double-buffered input + hidden + fused output block (weights are tiny)
        return 2 * (x_bytes(tb) + tb * C * 4 + tb * (A + S + C) * 4)

    best = 1
    for tb in range(1, min(B, max_tb) + 1):
        if B % tb == 0 and block_bytes(tb) <= vmem_budget_bytes:
            best = tb
    # only shard across v7x's second TensorCore when the per-block stream is big
    if best == B and B % 2 == 0 and x_bytes(best) >= megacore_split_bytes:
        best = B // 2
    return best


def identity_forward(state, last_hidden, params):
    """One forward pass of Identity ('general' alignment).

    state       : (B, C, Hh, Ww) float32 (NCHW)
    last_hidden : (B, 1, C) float32  (== self.last_hidden)
    returns (q_values (B, A), attention_weights (B, S, 1), new_last_hidden (B, 1, C))
    """
    w1, b1, wq, bq = params["w1"], params["b1"], params["wq"], params["bq"]
    B, C, Hh, Ww = state.shape
    S = Hh * Ww
    A = wq.shape[0]

    TB = _pick_batch_block(B, S, C, A)
    G = B // TB

    # Channels-last input_vectors, i.e. the (B, S, C) layout shapes.build_vector
    # hands the torch Attention.  For production hidden_size=128 this makes the
    # dominant x stream lane-dense (lanes = C).
    # TODO(synk): shapes.build_vector is an external module; assumed to be the
    # standard NCHW -> (B, H*W, C) channels-last flatten.
    iv = jnp.transpose(state.reshape(B, C, S), (0, 2, 1)).reshape(G, TB, S, C)
    h = last_hidden.reshape(G, TB, C)

    w1_aug = jnp.concatenate([w1, b1.reshape(C, 1)], axis=1)   # (C, C+1)
    wq_t = wq.T                                                # (C, A)
    bq_2d = bq.reshape(1, A)

    X = A + S + C
    out = pl.pallas_call(
        _identity_kernel,
        out_shape=jax.ShapeDtypeStruct((G, TB, X), jnp.float32),
        grid_spec=pltpu.PrefetchScalarGridSpec(
            num_scalar_prefetch=0,
            grid=(G,),
            in_specs=[
                pl.BlockSpec((1, TB, S, C), lambda g: (g, 0, 0, 0)),  # input_vectors
                pl.BlockSpec((1, TB, C), lambda g: (g, 0, 0)),        # last_hidden
                pl.BlockSpec((C, C + 1), lambda g: (0, 0)),           # [W1 | b1]
                pl.BlockSpec((C, A), lambda g: (0, 0)),               # q_net weight^T
                pl.BlockSpec((1, A), lambda g: (0, 0)),               # q_net bias
            ],
            out_specs=pl.BlockSpec((1, TB, X), lambda g: (g, 0, 0)),  # fused slab
        ),
        compiler_params=pltpu.CompilerParams(
            dimension_semantics=("parallel",),
            vmem_limit_bytes=32 * 1024 * 1024),
    )(iv, h, w1_aug, wq_t, bq_2d)

    out = out.reshape(B, X)
    q_values = out[:, :A]
    attention_weights = out[:, A:A + S].reshape(B, S, 1)   # torch softmax(dim=1) shape
    new_last_hidden = out[:, A + S:].reshape(B, 1, C)      # == self.last_hidden update
    return q_values, attention_weights, new_last_hidden


def _reference_forward(state, last_hidden, params):
    """Pure-JAX reference with the original module's semantics (verification)."""
    w1, b1, wq, bq = params["w1"], params["b1"], params["wq"], params["bq"]
    B, C, Hh, Ww = state.shape
    iv = jnp.transpose(state.reshape(B, C, Hh * Ww), (0, 2, 1))      # (B, S, C)
    h = last_hidden[:, 0, :]                                         # (B, C)
    proj = iv @ w1.T + b1                                            # fc_1
    scores = jnp.einsum("bsh,bh->bs", proj, h)[..., None]            # (B, S, 1)
    w = jax.nn.softmax(scores, axis=1)
    ctx = jnp.sum(iv * w, axis=1, keepdims=True)                     # (B, 1, C)
    q = ctx[:, 0, :] @ wq.T + bq
    return q, w, ctx


if __name__ == "__main__":
    # small deterministic config: batch=2, channels(hidden)=32, spatial=4x4 -> seq=16
    B, C, HH, WW = 2, 32, 4, 4
    hidden_size = C
    nr_actions = 4

    key = jax.random.PRNGKey(0)
    k_state, k_w1, k_b1, k_wq, k_bq = jax.random.split(key, 5)

    state = jax.random.normal(k_state, (B, C, HH, WW), dtype=jnp.float32)

    # deterministic parameter init (PyTorch-Linear-like uniform ranges)
    lim1 = 1.0 / jnp.sqrt(hidden_size)
    params = {
        "w1": jax.random.uniform(k_w1, (hidden_size, hidden_size), jnp.float32, -lim1, lim1),
        "b1": jax.random.uniform(k_b1, (hidden_size,), jnp.float32, -lim1, lim1),
        "wq": jax.random.uniform(k_wq, (nr_actions, hidden_size), jnp.float32, -lim1, lim1),
        "bq": jax.random.uniform(k_bq, (nr_actions,), jnp.float32, -lim1, lim1),
    }

    # init_hidden: zeros of shape (batch, 1, hidden)
    last_hidden = jnp.zeros((B, 1, hidden_size), dtype=jnp.float32)

    # step 1 (hidden = zeros), then step 2 feeding the context back, like the
    # stateful module (self.last_hidden = context) -- exercises the fc_1 path.
    q1, w1_att, hid1 = identity_forward(state, last_hidden, params)
    q2, w2_att, hid2 = identity_forward(state, hid1, params)
    jax.block_until_ready((q2, w2_att, hid2))

    # verify against pure-JAX reference (exact softmax normalization now; only
    # MXU f32 accumulation-order differences remain).
    rq1, rw1, rh1 = _reference_forward(state, last_hidden, params)
    rq2, rw2, rh2 = _reference_forward(state, rh1, params)
    tol = dict(atol=1e-4, rtol=1e-4)
    assert jnp.allclose(q1, rq1, **tol)
    assert jnp.allclose(w1_att, rw1, **tol)
    assert jnp.allclose(hid1, rh1, **tol)
    assert jnp.allclose(q2, rq2, **tol)
    assert jnp.allclose(w2_att, rw2, **tol)
    assert jnp.allclose(hid2, rh2, **tol)

    print("KERNEL_OK")
</pallas_src>

<mosaic_0001>
module attributes {stable_mosaic.version = 11 : i64} {
  func.func @_identity_kernel(%arg0: i32, %arg1: memref<1x2x16x32xf32, #tpu.memory_space<vmem>>, %arg2: memref<1x2x32xf32, #tpu.memory_space<vmem>>, %arg3: memref<32x33xf32, #tpu.memory_space<vmem>>, %arg4: memref<32x4xf32, #tpu.memory_space<vmem>>, %arg5: memref<1x4xf32, #tpu.memory_space<vmem>>, %arg6: memref<1x2x52xf32, #tpu.memory_space<vmem>>) attributes {dimension_semantics = [#tpu.dimension_semantics<parallel>], iteration_bounds = array<i64: 1>, scalar_prefetch = 0 : i64, scratch_operands = 0 : i64, tpu.core_type = #tpu.core_type<tc>, window_params = [{transform_indices = @transform_0, window_bounds = array<i64: 1, 2, 16, 32>}, {transform_indices = @transform_1, window_bounds = array<i64: 1, 2, 32>}, {pipeline_mode = #tpu.pipeline_mode<synchronous>, transform_indices = @transform_2, window_bounds = array<i64: 32, 33>}, {pipeline_mode = #tpu.pipeline_mode<synchronous>, transform_indices = @transform_3, window_bounds = array<i64: 32, 4>}, {pipeline_mode = #tpu.pipeline_mode<synchronous>, transform_indices = @transform_4, window_bounds = array<i64: 1, 4>}, {transform_indices = @transform_5, window_bounds = array<i64: 1, 2, 52>}]} {
    %c0 = arith.constant 0 : index
    %c0_0 = arith.constant 0 : index
    %c0_1 = arith.constant 0 : index
    %c0_2 = arith.constant 0 : index
    %0 = vector.load %arg1[%c0, %c0_0, %c0_1, %c0_2] : memref<1x2x16x32xf32, #tpu.memory_space<vmem>>, vector<1x2x16x32xf32>
    %1 = vector.shape_cast %0 : vector<1x2x16x32xf32> to vector<2x16x32xf32>
    %c0_3 = arith.constant 0 : index
    %c0_4 = arith.constant 0 : index
    %c0_5 = arith.constant 0 : index
    %2 = vector.load %arg2[%c0_3, %c0_4, %c0_5] : memref<1x2x32xf32, #tpu.memory_space<vmem>>, vector<1x2x32xf32>
    %3 = vector.shape_cast %2 : vector<1x2x32xf32> to vector<2x32xf32>
    %c0_6 = arith.constant 0 : index
    %c0_7 = arith.constant 0 : index
    %4 = vector.load %arg3[%c0_6, %c0_7] : memref<32x33xf32, #tpu.memory_space<vmem>>, vector<32x33xf32>
    %cst = arith.constant dense<0.000000e+00> : vector<2x33xf32>
    %5 = tpu.matmul %3, %4, %cst {dimension_numbers = #tpu.dot_dimension_numbers<[1], [0], [0], [1], [0, 0, 1, 1], [], []>} : vector<2x32xf32>, vector<32x33xf32>, vector<2x33xf32> -> vector<2x33xf32>
    %6 = vector.extract_strided_slice %5 {offsets = [0, 0], sizes = [2, 32], strides = [1, 1]} : vector<2x33xf32> to vector<2x32xf32>
    %7 = vector.extract_strided_slice %5 {offsets = [0, 32], sizes = [2, 1], strides = [1, 1]} : vector<2x33xf32> to vector<2x1xf32>
    %8 = vector.shape_cast %6 : vector<2x32xf32> to vector<2x1x32xf32>
    "tpu.trace_start"() <{level = 10 : i32, message = "bnc,bsc->bns"}> : () -> ()
    %cst_8 = arith.constant dense<0.000000e+00> : vector<2x1x16xf32>
    %9 = tpu.matmul %8, %1, %cst_8 {dimension_numbers = #tpu.dot_dimension_numbers<[2], [2], [1], [1], [0, 0, 0, 1, 1, 1], [0], [0]>} : vector<2x1x32xf32>, vector<2x16x32xf32>, vector<2x1x16xf32> -> vector<2x1x16xf32>
    "tpu.trace_stop"() : () -> ()
    %10 = vector.shape_cast %9 : vector<2x1x16xf32> to vector<2x16xf32>
    %11 = vector.broadcast %7 : vector<2x1xf32> to vector<2x16xf32>
    %12 = arith.addf %10, %11 : vector<2x16xf32>
    %cst_9 = arith.constant dense<0xFF800000> : vector<2xf32>
    %13 = vector.multi_reduction <maximumf>, %12, %cst_9 [1] : vector<2x16xf32> to vector<2xf32>
    %14 = vector.shape_cast %13 : vector<2xf32> to vector<2x1xf32>
    %15 = vector.broadcast %14 : vector<2x1xf32> to vector<2x16xf32>
    %16 = arith.subf %12, %15 : vector<2x16xf32>
    %17 = math.exp %16 : vector<2x16xf32>
    %cst_10 = arith.constant dense<0.000000e+00> : vector<2xf32>
    %18 = vector.multi_reduction <add>, %17, %cst_10 [1] : vector<2x16xf32> to vector<2xf32>
    %19 = vector.shape_cast %18 : vector<2xf32> to vector<2x1xf32>
    %20 = vector.broadcast %19 : vector<2x1xf32> to vector<2x16xf32>
    %21 = arith.divf %17, %20 : vector<2x16xf32>
    %22 = vector.shape_cast %21 : vector<2x16xf32> to vector<2x1x16xf32>
    "tpu.trace_start"() <{level = 10 : i32, message = "bns,bsc->bnc"}> : () -> ()
    %cst_11 = arith.constant dense<0.000000e+00> : vector<2x1x32xf32>
    %23 = tpu.matmul %22, %1, %cst_11 {dimension_numbers = #tpu.dot_dimension_numbers<[2], [1], [1], [2], [0, 0, 0, 1, 1, 2], [0], [0]>} : vector<2x1x16xf32>, vector<2x16x32xf32>, vector<2x1x32xf32> -> vector<2x1x32xf32>
    "tpu.trace_stop"() : () -> ()
    %24 = vector.shape_cast %23 : vector<2x1x32xf32> to vector<2x32xf32>
    %c0_12 = arith.constant 0 : index
    %c0_13 = arith.constant 0 : index
    %25 = vector.load %arg4[%c0_12, %c0_13] : memref<32x4xf32, #tpu.memory_space<vmem>>, vector<32x4xf32>
    %cst_14 = arith.constant dense<0.000000e+00> : vector<2x4xf32>
    %26 = tpu.matmul %24, %25, %cst_14 {dimension_numbers = #tpu.dot_dimension_numbers<[1], [0], [0], [1], [0, 0, 1, 1], [], []>} : vector<2x32xf32>, vector<32x4xf32>, vector<2x4xf32> -> vector<2x4xf32>
    %c0_15 = arith.constant 0 : index
    %c0_16 = arith.constant 0 : index
    %27 = vector.load %arg5[%c0_15, %c0_16] : memref<1x4xf32, #tpu.memory_space<vmem>>, vector<1x4xf32>
    %28 = vector.broadcast %27 : vector<1x4xf32> to vector<2x4xf32>
    %29 = arith.addf %26, %28 : vector<2x4xf32>
    %c0_17 = arith.constant 0 : index
    %c0_18 = arith.constant 0 : index
    %c0_19 = arith.constant 0 : index
    %30 = vector.load %arg6[%c0_17, %c0_18, %c0_19] : memref<1x2x52xf32, #tpu.memory_space<vmem>>, vector<1x2x4xf32>
    %31 = vector.shape_cast %30 : vector<1x2x4xf32> to vector<2x4xf32>
    %32 = vector.shape_cast %29 : vector<2x4xf32> to vector<1x2x4xf32>
    tpu.vector_store %arg6[%c0_17, %c0_18, %c0_19], %32 {strides = array<i32>} : memref<1x2x52xf32, #tpu.memory_space<vmem>>, vector<1x2x4xf32>,
    %c0_20 = arith.constant 0 : index
    %c0_21 = arith.constant 0 : index
    %c4 = arith.constant 4 : index
    %33 = vector.load %arg6[%c0_20, %c0_21, %c4] : memref<1x2x52xf32, #tpu.memory_space<vmem>>, vector<1x2x16xf32>
    %34 = vector.shape_cast %33 : vector<1x2x16xf32> to vector<2x16xf32>
    %35 = vector.shape_cast %21 : vector<2x16xf32> to vector<1x2x16xf32>
    tpu.vector_store %arg6[%c0_20, %c0_21, %c4], %35 {strides = array<i32>} : memref<1x2x52xf32, #tpu.memory_space<vmem>>, vector<1x2x16xf32>,
    %c0_22 = arith.constant 0 : index
    %c0_23 = arith.constant 0 : index
    %c20 = arith.constant 20 : index
    %36 = vector.load %arg6[%c0_22, %c0_23, %c20] : memref<1x2x52xf32, #tpu.memory_space<vmem>>, vector<1x2x32xf32>
    %37 = vector.shape_cast %36 : vector<1x2x32xf32> to vector<2x32xf32>
    %38 = vector.shape_cast %24 : vector<2x32xf32> to vector<1x2x32xf32>
    tpu.vector_store %arg6[%c0_22, %c0_23, %c20], %38 {strides = array<i32>} : memref<1x2x52xf32, #tpu.memory_space<vmem>>, vector<1x2x32xf32>,
    return
  }
  func.func @transform_0(%arg0: i32) -> (i32, i32, i32, i32) {
    %c0_i32 = arith.constant 0 : i32
    %c0_i32_0 = arith.constant 0 : i32
    %c0_i32_1 = arith.constant 0 : i32
    %c0_i32_2 = arith.constant 0 : i32
    return %arg0, %c0_i32, %c0_i32_0, %c0_i32_1 : i32, i32, i32, i32
  }
  func.func @transform_1(%arg0: i32) -> (i32, i32, i32) {
    %c0_i32 = arith.constant 0 : i32
    %c0_i32_0 = arith.constant 0 : i32
    %c0_i32_1 = arith.constant 0 : i32
    return %arg0, %c0_i32, %c0_i32_0 : i32, i32, i32
  }
  func.func @transform_2(%arg0: i32) -> (i32, i32) {
    %c0_i32 = arith.constant 0 : i32
    %c0_i32_0 = arith.constant 0 : i32
    %c0_i32_1 = arith.constant 0 : i32
    return %c0_i32, %c0_i32_0 : i32, i32
  }
  func.func @transform_3(%arg0: i32) -> (i32, i32) {
    %c0_i32 = arith.constant 0 : i32
    %c0_i32_0 = arith.constant 0 : i32
    %c0_i32_1 = arith.constant 0 : i32
    return %c0_i32, %c0_i32_0 : i32, i32
  }
  func.func @transform_4(%arg0: i32) -> (i32, i32) {
    %c0_i32 = arith.constant 0 : i32
    %c0_i32_0 = arith.constant 0 : i32
    %c0_i32_1 = arith.constant 0 : i32
    return %c0_i32, %c0_i32_0 : i32, i32
  }
  func.func @transform_5(%arg0: i32) -> (i32, i32, i32) {
    %c0_i32 = arith.constant 0 : i32
    %c0_i32_0 = arith.constant 0 : i32
    %c0_i32_1 = arith.constant 0 : i32
    return %arg0, %c0_i32, %c0_i32_0 : i32, i32, i32
  }
}

</mosaic_0001>

<bundles_post_ra>
// kernel: tpu_custom_call.1
= control target key start
LH: loop header
LB: loop body
LE: loop exit
PB: predicated region body
PF: predicated region fallthrough
CT: control target
= control target key end

     0   :  { %10 = vsyncpa [#allocation3], 0  ;;  %s908_s0 = inlined_call_operand.vmem [shape: f32[1,2,16,32], index: 0, kind: input, shape index: {}]   ;;  %s909_s1 = inlined_call_operand.vmem [shape: f32[1,2,32], index: 1, kind: input, shape index: {}]   ;;  %s910_s2 = inlined_call_operand.hbm [shape: f32[32,33], index: 2, kind: input, shape index: {}]   ;;  %s911_s3 = inlined_call_operand.vmem [shape: f32[32,4], index: 3, kind: input, shape index: {}]   ;;  %s912_s4 = inlined_call_operand.vmem [shape: f32[1,4], index: 4, kind: input, shape index: {}]   ;;  %s913_s5 = inlined_call_operand.hbm [shape: f32[1,2,52], index: 5, kind: output, shape index: {}]  }
   0x1   :  { %11 = vsyncpa [#allocation4], 0  ;;  %s781_s18 = smov [#allocation2]   ;;  %s733_s22 = scalar_lea.hbm %s910_s2, 512 }
   0x2   :  { %s21_s19 = sshll.u32 %s781_s18, 4  ;;  %p734_p0 = scmp.ne.s32.totalorder %s910_s2, %s733_s22  ;;  %s22_s19 = int_to_ptr.vmem [resolvable:$true] %s21_s19 }
   0x3   :  { %p737_p1 = scmp.lt.u32.totalorder %s733_s22, %s910_s2 }
   0x5   :  { %p739_p2 = pnand %p737_p1, %p734_p0 }
   0x7   :  { %742 = shalt.err (!%p739_p2)
}
   0x8   :  { %s743_s27 = scalar_lea.vmem %s22_s19, 512  ;;  %p748_p4 = scmp.lt.s32.totalorder %s22_s19, %s22_s19 }
   0x9   :  { %p744_p3 = scmp.ne.s32.totalorder %s22_s19, %s743_s27  ;;  %p749_p5 = scmp.lt.s32.totalorder %s743_s27, %s743_s27 }
   0xb   :  { %p750_p6 = por %p749_p5, %p748_p4 }
   0xd   :  { %p751_p7 = pnand %p750_p6, %p744_p3 }
   0xf   :  { %754 = shalt.err (!%p751_p7)
}
  0x10   :  { %s782_s28 = smov 128   ;;  %s783_s29 = smov 8  }
  0x11   :  { %27 = dma.hbm_to_vmem [thread:$0]  %s910_s2, 512, %s22_s19, [#allocation3], %s782_s28, %s782_s28, %s783_s29  }
  0x12   :  { %777 = dma.done.wait [#allocation3], 512  }
  0x13   :  { %778 = vsyncadd [#allocation3], 4294966784  ;;  %v784_v0 = vmov 0.0|0.0   ;;  %vm785_vm0 = vmmov 0   ;;  %v786_v1 = vmov 0.0   ;;  %v787_v2 = vmov 32  }
  0x14   :  { %687 = vmatprep.subr.bf16.mxu0 %v784_v0  ;;  %645 = vmatprep.mubr.msk.f32.mxu0 %vm785_vm0, %v786_v1  ;;  %v40_v3 = vld [vmem:[#allocation2] sm:$0xff]  ;;  %v41_v4 = vld [vmem:[#allocation2 + $0x8] sm:$0xff]  ;;  %v42_v5 = vld [vmem:[#allocation2 + $0x10] sm:$0xff]  ;;  %vm44_vm1 = vcmask 261120   ;;  %v788_v16 = vmov 1966171168   ;;  %v122_v18 = vlaneseq }
  0x15   :  { %693 = vmatprep.subr.bf16.mxu1 %v784_v0  ;;  %724 = vset.pattern.permute.xlu0 %v787_v2  ;;  %v688_v6 = vpack.c.bf16 %v41_v4, %v40_v3  ;;  %v43_v7 = vld [vmem:[#allocation2 + $0x18] sm:$0xff]  ;;  %v35_v8 = vld [vmem:[%s908_s0] sm:$0xff]  ;;  %v36_v9 = vld [vmem:[%s908_s0 + $0x8] sm:$0xff]  ;;  %v120_v17 = vunpack.c.l.s4 %v788_v16  ;;  %vm308_vm3 = vcmask 1041409   ;;  %vm311_vm4 = vcmask 123904   ;;  %s790_s23 = smov 20  }
  0x16   :  { %652 = vmatprep.mubr.msk.f32.mxu1 %vm785_vm0, %v786_v1  ;;  %vm695_vm2 = vmpackc.low %vm44_vm1, %vm44_vm1  ;;  %v691_v10 = vpack.c.bf16 %v43_v7, %v42_v5  ;;  %v694_v11 = vpack.c.bf16 %v36_v9, %v35_v8  ;;  %v39_v12 = vld [vmem:[%s909_s1] sm:$0x3]  ;;  %v37_v13 = vld [vmem:[%s908_s0 + $0x10] sm:$0xff]  ;;  %v123_v20 = vshrl.u32 %v122_v18, 7  ;;  %vm341_vm5 = vcmask 130048  }
  0x17   :  { %689 = vmatpush3.bf16.msra.mxu0 %v688_v6  ;;  %v38_v14 = vld [vmem:[%s908_s0 + $0x18] sm:$0xff]  ;;  %v121_v19 = vunpack.c.0.s8 %v120_v17  ;;  %s789_s0 = smov 4   ;;  %v488_v58 = vld [vmem:[%s911_s3] sm:$0xff]  ;;  %v489_v59 = vld [vmem:[%s911_s3 + $0x8] sm:$0xff]  ;;  %vm575_vm6 = vcmask 25600   ;;  %vm582_vm7 = vcmask 156704  }
  0x18   :  { %690 = vmatprep.subr.bf16.mxu0 %v784_v0  ;;  %696 = vmatpush3.bf16.xpose.msk.msra.mxu1 %vm695_vm2, %v694_v11  ;;  %v698_v15 = vpack.c.bf16 %v38_v14, %v37_v13  ;;  %v708_v60 = vpack.c.bf16 %v489_v59, %v488_v58  ;;  %v490_v61 = vld [vmem:[%s911_s3 + $0x10] sm:$0xff]  ;;  %v491_v62 = vld [vmem:[%s911_s3 + $0x18] sm:$0xff]  ;;  %s791_s3 = smov [#allocation5]   ;;  %vm587_vm8 = vcmask 418976  }
  0x19   :  { %701 = vmatprep.subr.bf16.mxu1 %v784_v0  ;;  %v124_v21 = vsub.s32 %v121_v19, %v123_v20  ;;  %v711_v63 = vpack.c.bf16 %v491_v62, %v490_v61  ;;  %s595_s26 = sshll.u32 %s791_s3, 4  ;;  %s596_s26 = int_to_ptr.vmem [resolvable:$true] %s595_s26 }
  0x1a   :  { %s755_s27 = scalar_lea.vmem %s596_s26, 32  ;;  %p760_p9 = scmp.lt.s32.totalorder %s596_s26, %s596_s26 }
  0x1b   :  { %692 = vmatpush3.bf16.msra.mxu0 %v691_v10  ;;  %p756_p8 = scmp.ne.s32.totalorder %s596_s26, %s755_s27  ;;  %p761_p10 = scmp.lt.s32.totalorder %s755_s27, %s755_s27 }
  0x1c   :  { %697 = vmatprep.subr.bf16.mxu0 %v784_v0 }
  0x1d   :  { %p762_p11 = por %p761_p10, %p760_p9 }
  0x1e   :  { %646 = vmatmul.mubr.msk.f32.vlgmr.msra.gmra.mrb[0].mxu0 %vm44_vm1, %v39_v12 }
  0x1f   :  { %659 = vmatprep.mubr.msk.f32.mxu0 %vm785_vm0, %v786_v1  ;;  %p763_p12 = pnand %p762_p11, %p756_p8 }
  0x24   :  { %700 = vmatpush3.bf16.xpose.msk.msra.mxu0 %vm695_vm2, %v698_v15 }
  0x25   :  { %707 = vmatprep.subr.bf16.mxu0 %v784_v0 }
  0xf1   :  { %v114_v22 = vpop.f32.mrb[0].mxu0 }
  0xf2   :  { %v125_v23 = vrot.slane %v114_v22, %v124_v21  ;;  %298 = vperm.xlu0 %724, %v114_v22   ;;  %v647_v24 = vpop.f32.mrb[1].mxu0 }
  0xf4   :  { %v126_v25 = vcombine.high %v125_v23, %v125_v23  ;;  %v133_v26 = vrot.slane %v125_v23, %v124_v21 }
  0xf6   :  { %v140_v27 = vrot.slane %v126_v25, %v124_v21  ;;  %653 = vmatmul.mubr.msk.f32.vlgmr.msra.gmra.mrb[0].mxu1 %vm44_vm1, %v133_v26 }
  0xf7   :  { %703 = vmatpush3.bf16.msra.mxu1 %v694_v11  ;;  %666 = vmatprep.mubr.msk.f32.mxu1 %vm785_vm0, %v786_v1 }
  0xf8   :  { %660 = vmatmul.mubr.msk.f32.vlgmr.msra.gmra.mrb[2].mxu0 %vm44_vm1, %v140_v27  ;;  %704 = vmatprep.subr.bf16.mxu1 %v784_v0 }
  0xf9   :  { %684 = vmatprep.mubr.msk.f32.mxu0 %vm785_vm0, %v786_v1  ;;  %709 = vmatpush3.bf16.msra.mxu0 %v708_v60 }
  0xfa   :  { %710 = vmatprep.subr.bf16.mxu0 %v784_v0  ;;  %v613_v0 = vld [vmem:[%s912_s4] ss:$0 sm:$0xff] }
  0xfd   :  { %712 = vmatpush3.bf16.msra.mxu0 %v711_v63 }
 0x171   :  { %v299_v28 = vpop.permute.xlu0 %298 }
 0x172   :  { %v300_v30 = vrot.slane %v299_v28, 1 }
 0x1c9   :  { %v215_v29 = vpop.f32.mrb[0].mxu1 }
 0x1ca   :  { %v654_v31 = vpop.f32.mrb[1].mxu1  ;;  %v303_v35 = vadd.f32 %v299_v28, %v215_v29 }
 0x1cb   :  { %v293_v32 = vpop.f32.mrb[2].mxu0 }
 0x1cc   :  { %v304_v33 = vadd.f32 %v300_v30, %v293_v32  ;;  %v661_v34 = vpop.f32.mrb[3].mxu0 }
 0x1ce   :  { %v307_v36 = vrot.slane %v304_v33, 7 }
 0x1d0   :  { %v309_v37 = vsel %vm308_vm3, %v307_v36, %v303_v35 }
 0x1d1   :  { %v312_v38 = vsel %vm311_vm4, %v309_v37, -inf }
 0x1d2   :  { %313 = vmax.xlane.f32.xlu0 %v312_v38 }
 0x25f   :  { %v314_v39 = vpop.xlane.xlu0 %313 }
 0x260   :  { %v316_v40 = vrot.slane %v314_v39, 1  ;;  %v319_v41 = vsub.f32 %v303_v35, %v314_v39 }
 0x262   :  { %v320_v42 = vsub.f32 %v304_v33, %v316_v40  ;;  %v321_v43 = vmul.f32 1.442695, %v319_v41 }
 0x264   :  { %v323_v44 = vmul.f32 1.442695, %v320_v42 }
 0x266   :  { %725 = vpow2.f32 %v323_v44 }
 0x267   :  { %727 = vpow2.f32 %v321_v43 }
 0x270   :  { %v726_v45 = vpop.eup %725 }
 0x271   :  { %v327_v46 = vrot.slane %v726_v45, 7  ;;  %v728_v47 = vpop.eup %727 }
 0x273   :  { %v328_v48 = vsel %vm308_vm3, %v327_v46, %v728_v47 }
 0x274   :  { %v330_v49 = vsel %vm311_vm4, %v328_v48, 0.0 }
 0x275   :  { %331 = vadd.xlane.f32.xlu1 %v330_v49 }
 0x302   :  { %v332_v50 = vpop.xlane.xlu1 %331 }
 0x303   :  { %v334_v51 = vrot.slane %v332_v50, 1  ;;  %729 = vrcp.f32 %v332_v50 }
 0x305   :  { %731 = vrcp.f32 %v334_v51 }
 0x30d   :  { %v730_v52 = vpop.eup %729 }
 0x30e   :  { %v338_v53 = vmul.f32 %v730_v52, %v728_v47 }
 0x30f   :  { %v732_v54 = vpop.eup %731 }
 0x310   :  { %667 = vmatmul.mubr.msk.f32.vlgmr.msra.gmra.mrb[2].mxu1 %vm341_vm5, %v338_v53  ;;  %v340_v55 = vmul.f32 %v732_v54, %v726_v45 }
 0x311   :  { %706 = vmatpush3.bf16.msra.mxu1 %v698_v15  ;;  %673 = vmatprep.mubr.msk.f32.mxu1 %vm785_vm0, %v786_v1 }
 0x312   :  { %v577_v56 = vrot.slane %v340_v55, 7 }
 0x314   :  { %674 = vmatmul.mubr.msk.f32.vlgmr.msra.gmra.mrb[4].mxu1 %vm341_vm5, %v340_v55  ;;  %v578_v57 = vsel %vm308_vm3, %v577_v56, %v338_v53 }
 0x315   :  { %579 = vrot.lane.b32.xlu1 %v578_v57, %s789_s0 }
 0x387   :  { %v580_v7 = vpop.permute.xlu1 %579 }
 0x3e3   :  { %v411_v1 = vpop.f32.mrb[2].mxu1 }
 0x3e4   :  { %v668_v2 = vpop.f32.mrb[3].mxu1 }
 0x3e7   :  { %v484_v3 = vpop.f32.mrb[4].mxu1 }
 0x3e8   :  { %v501_v4 = vrot.slane %v484_v3, 7  ;;  %v675_v5 = vpop.f32.mrb[5].mxu1 }
 0x3ea   :  { %v502_v6 = vsel %vm308_vm3, %v501_v4, %v411_v1 }
 0x3eb   :  { %584 = vrot.lane.b32.xlu1 %v502_v6, %s790_s23  ;;  %685 = vmatmul.mubr.msk.f32.vlgmr.msra.gmra.mrb[4].mxu0 %vm44_vm1, %v502_v6 }
 0x45d   :  { %v585_v11 = vpop.permute.xlu1 %584 }
 0x4be   :  { %v571_v8 = vpop.f32.mrb[4].mxu0 }
 0x4bf   :  { %v572_v9 = vadd.f32 %v613_v0, %v571_v8  ;;  %v686_v10 = vpop.f32.mrb[5].mxu0 }
 0x4c1   :  { %576 = vst.msk [vmem:[#allocation5] sm:$0x3] %vm575_vm6, %v572_v9 }
 0x4c2   :  { %583 = vst.msk [vmem:[#allocation5] sm:$0x3] %vm582_vm7, %v580_v7 }
 0x4c3   :  { %588 = vst.msk [vmem:[#allocation5] sm:$0x3] %vm587_vm8, %v585_v11 }
 0x4c4   :  { %766 = shalt.err (!%p763_p12)
}
 0x4c5   :  { %s767_s29 = scalar_lea.hbm %s913_s5, 32 }
 0x4c6   :  { %p768_p13 = scmp.ne.s32.totalorder %s913_s5, %s767_s29  ;;  %p771_p0 = scmp.lt.u32.totalorder %s767_s29, %s913_s5 }
 0x4c8   :  { %p773_p1 = pnand %p771_p0, %p768_p13 }
 0x4ca   :  { %776 = shalt.err (!%p773_p1)
}
 0x4cb   :  { %598 = dma.vmem_to_hbm [thread:$0]  %s596_s26, 32, %s913_s5, [#allocation4]  }
 0x4cc   :  { %779 = dma.done.wait [#allocation4], 32  }
 0x4cd   :  { %780 = vsyncadd [#allocation4], 4294967264 }
 0x4ce   :  { %602 = vsyncpa [#allocation3], 1 }
 0x4cf   :  { %603 = vsyncpa [#allocation4], 1 }

</bundles_post_ra>
